<compile_context>
chip_gen: v7x
topology: tpu7x:2x2x1
jax: 0.10.0
libtpu: 0.0.40
codegen_flags: <defaults>
</compile_context>

<pallas_src>
import functools

import jax
import jax.numpy as jnp
from jax.experimental import pallas as pl
from jax.experimental.pallas import tpu as pltpu


def _bcast_mul_kernel(scale_ref, x_ref, o_ref, *, tc, align):
    # scale_ref: (C, 1) resident block; x_ref/o_ref: (tc, HW) per-step blocks.
    start = pl.program_id(0) * tc
    if align > 1:
        start = pl.multiple_of(start, align)
    scale = scale_ref[pl.ds(start, tc), :]          # (tc, 1), VPU-broadcast below
    o_ref[...] = x_ref[...] * scale


def _num_tensorcores():
    """2 TensorCores per chip on v7x, 1 on v5e/v6e. Safe fallback = 1."""
    try:
        kind = jax.devices()[0].device_kind.lower()
    except Exception:
        return 1
    return 2 if ("v7" in kind or "7x" in kind) else 1


def _pick_channel_tile(c, itemsize, num_tc):
    """Largest channel tile with an even per-core split and >=2 steps per core.

    Tile sizing is driven purely by step count / pipelining granularity —
    VMEM is >10x below the limit on all generations for this problem size.
    """
    min_sub = {4: 8, 2: 16, 1: 32}.get(itemsize, 8)
    cands = [tc for tc in range(c, 0, -1) if c % tc == 0 and tc % min_sub == 0]
    for want_steps in (2 * num_tc, num_tc):
        for tc in cands:
            g = c // tc
            if g % num_tc == 0 and g >= want_steps:
                return tc
    return cands[0] if cands else c


def broadcast_channel_mul(x175, x170, *, donate_activation=False):
    """x175: (1, C, 1, 1), x170: (1, C, H, W) -> (1, C, H, W)."""
    n, c, h, w = x170.shape
    assert x175.shape == (n, c, 1, 1)
    assert n == 1

    hw = h * w
    scale_2d = x175.reshape(c, 1)   # (C, 1)
    x_2d = x170.reshape(c, hw)      # (C, HW)

    itemsize = jnp.dtype(x170.dtype).itemsize
    num_tc = _num_tensorcores()
    tc = _pick_channel_tile(c, itemsize, num_tc)
    grid = (c // tc,)
    align = 8 if tc % 8 == 0 else 1

    kernel = functools.partial(_bcast_mul_kernel, tc=tc, align=align)

    cost = pl.CostEstimate(
        flops=c * hw,
        bytes_accessed=2 * c * hw * itemsize + c * jnp.dtype(x175.dtype).itemsize,
        transcendentals=0,
    )

    out_2d = pl.pallas_call(
        kernel,
        out_shape=jax.ShapeDtypeStruct((c, hw), x170.dtype),
        grid=grid,
        in_specs=[
            # Resident per-channel scale: same block index every step -> one DMA.
            pl.BlockSpec((c, 1), lambda i: (0, 0)),
            # Channel-tiled activation block; last dim = full HW (lane axis).
            pl.BlockSpec((tc, hw), lambda i: (i, 0)),
        ],
        out_specs=pl.BlockSpec((tc, hw), lambda i: (i, 0)),
        compiler_params=pltpu.CompilerParams(
            dimension_semantics=("parallel",)
        ),
        cost_estimate=cost,
        input_output_aliases=({1: 0} if donate_activation else {}),
    )(scale_2d, x_2d)

    return out_2d.reshape(n, c, h, w)


if __name__ == "__main__":
    key = jax.random.PRNGKey(0)
    k1, k2 = jax.random.split(key)

    # Shapes from the module's forward: x175 (1,384,1,1), x170 (1,384,28,28)
    C, H, W = 384, 28, 28
    x175 = jax.random.normal(k1, (1, C, 1, 1), dtype=jnp.float32)
    x170 = jax.random.normal(k2, (1, C, H, W), dtype=jnp.float32)

    out = broadcast_channel_mul(x175, x170)
    out = jax.block_until_ready(out)

    # Correctness check against plain-JAX broadcasting semantics.
    ref = x175 * x170
    assert out.shape == ref.shape == (1, C, H, W)
    assert jnp.allclose(out, ref, atol=1e-6, rtol=1e-6)

    print("KERNEL_OK")
</pallas_src>

<mosaic_0001>
module attributes {stable_mosaic.version = 11 : i64} {
  func.func @_bcast_mul_kernel(%arg0: i32, %arg1: memref<384x1xf32, #tpu.memory_space<vmem>>, %arg2: memref<192x784xf32, #tpu.memory_space<vmem>>, %arg3: memref<192x784xf32, #tpu.memory_space<vmem>>) attributes {dimension_semantics = [#tpu.dimension_semantics<parallel>], iteration_bounds = array<i64: 2>, scalar_prefetch = 0 : i64, scratch_operands = 0 : i64, tpu.core_type = #tpu.core_type<tc>, window_params = [{pipeline_mode = #tpu.pipeline_mode<synchronous>, transform_indices = @transform_0, window_bounds = array<i64: 384, 1>}, {transform_indices = @transform_1, window_bounds = array<i64: 192, 784>}, {transform_indices = @transform_2, window_bounds = array<i64: 192, 784>}]} {
    %c192_i32 = arith.constant 192 : i32
    %0 = arith.muli %arg0, %c192_i32 : i32
    %1 = tpu.assume_multiple %0, 8 : i32
    %2 = arith.index_cast %1 : i32 to index
    %c0 = arith.constant 0 : index
    %3 = vector.load %arg1[%2, %c0] : memref<384x1xf32, #tpu.memory_space<vmem>>, vector<192x1xf32>
    %c0_0 = arith.constant 0 : index
    %c0_1 = arith.constant 0 : index
    %4 = vector.load %arg2[%c0_0, %c0_1] : memref<192x784xf32, #tpu.memory_space<vmem>>, vector<192x784xf32>
    %5 = vector.broadcast %3 : vector<192x1xf32> to vector<192x784xf32>
    %6 = arith.mulf %4, %5 : vector<192x784xf32>
    %c0_2 = arith.constant 0 : index
    %c0_3 = arith.constant 0 : index
    %7 = vector.load %arg3[%c0_2, %c0_3] : memref<192x784xf32, #tpu.memory_space<vmem>>, vector<192x784xf32>
    tpu.vector_store %arg3[%c0_2, %c0_3], %6 {strides = array<i32>} : memref<192x784xf32, #tpu.memory_space<vmem>>, vector<192x784xf32>,
    return
  }
  func.func @transform_0(%arg0: i32) -> (i32, i32) {
    %c0_i32 = arith.constant 0 : i32
    %c0_i32_0 = arith.constant 0 : i32
    %c0_i32_1 = arith.constant 0 : i32
    return %c0_i32, %c0_i32_0 : i32, i32
  }
  func.func @transform_1(%arg0: i32) -> (i32, i32) {
    %c0_i32 = arith.constant 0 : i32
    %c0_i32_0 = arith.constant 0 : i32
    return %arg0, %c0_i32 : i32, i32
  }
  func.func @transform_2(%arg0: i32) -> (i32, i32) {
    %c0_i32 = arith.constant 0 : i32
    %c0_i32_0 = arith.constant 0 : i32
    return %arg0, %c0_i32 : i32, i32
  }
}

</mosaic_0001>

<bundles_post_ra>
// kernel: tpu_custom_call.1
= control target key start
LH: loop header
LB: loop body
LE: loop exit
PB: predicated region body
PF: predicated region fallthrough
CT: control target
= control target key end

     0   :  { %s908_s9 = smov 0   ;;  %s1322_s0 = inlined_call_operand.vmem [shape: f32[384,1], index: 0, kind: input, shape index: {}]   ;;  %s1323_s1 = inlined_call_operand.vmem [shape: f32[384,784], index: 1, kind: input, shape index: {}]   ;;  %s1324_s2 = inlined_call_operand.vmem [shape: f32[384,784], index: 2, kind: output, shape index: {}]  }
   0x1 LB: > { %s863_s10 = sadd.s32 4294967295, %s890_s9   ;;  %p867_p0 = scmp.ge.s32.totalorder %s890_s9, 1  ;;  %s890_s9 = sphi %s908_s9, %s12_s9  }
   0x2   : > { %p114_p1 = scmp.lt.s32.totalorder %s890_s9, 3 }
   0x4   : > { %p115_p2 = pnand %p867_p0, %p114_p1 }
   0x5   : > { %s152_s11 = smul.u32 (!%p115_p2), 192, %s863_s10  ;;  %v892_v0 = vmov (!%p115_p2), 0   ;;  %vm640_vm0 = vcmask (!%p115_p2), 130048  }
   0x6   : > { %118 = sbr.rel (%p115_p2) target bundleno = 223 (0xdf), region = 28  ;;  %883 = vset.pattern.permute.xlu1 (!%p115_p2), %v892_v0  ;;  %882 = vset.pattern.permute.xlu0 (!%p115_p2), %v892_v0 }
   0x7   : > { %s921_s14 = scalar_lea.vmem (!%p115_p2), %s1322_s0, %s152_s11  ;;  %s138_s15 = smul.u32 (!%p115_p2), 24, %s863_s10 }
   0x8   : > { %v156_v1 = vld [vmem:[%s921_s14 + $0x10] sm:$0xff] (!%p115_p2)  ;;  %v154_v2 = vld [vmem:[%s921_s14] sm:$0xff] (!%p115_p2)  ;;  %v157_v3 = vld [vmem:[%s921_s14 + $0x18] sm:$0xff] (!%p115_p2) }
   0x9   : > { %358 = vperm.xlu1 (!%p115_p2), %883, %v156_v1   ;;  %348 = vperm.xlu0 (!%p115_p2), %882, %v154_v2   ;;  %v155_v4 = vld [vmem:[%s921_s14 + $0x8] sm:$0xff] (!%p115_p2)  ;;  %v158_v6 = vld [vmem:[%s921_s14 + $0x20] sm:$0xff] (!%p115_p2)  ;;  %v161_v7 = vld [vmem:[%s921_s14 + $0x38] sm:$0xff] (!%p115_p2)  ;;  %p139_p3 = scmp.lt.s32.totalorder (!%p115_p2), %s138_s15, 47 }
   0xa   : > { %v159_v5 = vld [vmem:[%s921_s14 + $0x28] sm:$0xff] (!%p115_p2)  ;;  %v160_v8 = vld [vmem:[%s921_s14 + $0x30] sm:$0xff] (!%p115_p2)  ;;  %v162_v10 = vld [vmem:[%s921_s14 + $0x40] sm:$0xff] (!%p115_p2) }
   0xb   : > { %v163_v9 = vld [vmem:[%s921_s14 + $0x48] sm:$0xff] (!%p115_p2)  ;;  %v165_v11 = vld [vmem:[%s921_s14 + $0x58] sm:$0xff] (!%p115_p2)  ;;  %v164_v12 = vld [vmem:[%s921_s14 + $0x50] sm:$0xff] (!%p115_p2) }
   0xc   : > { %v167_v13 = vld [vmem:[%s921_s14 + $0x68] sm:$0xff] (!%p115_p2)  ;;  %v166_v14 = vld [vmem:[%s921_s14 + $0x60] sm:$0xff] (!%p115_p2)  ;;  %v169_v15 = vld [vmem:[%s921_s14 + $0x78] sm:$0xff] (!%p115_p2) }
   0xd   : > { %363 = vperm.xlu1 %883, %v157_v3   ;;  %353 = vperm.xlu0 %882, %v155_v4   ;;  %v168_v16 = vld [vmem:[%s921_s14 + $0x70] sm:$0xff]  ;;  %v171_v17 = vld [vmem:[%s921_s14 + $0x88] sm:$0xff]  ;;  %v170_v18 = vld [vmem:[%s921_s14 + $0x80] sm:$0xff]  ;;  %s1326_s15 = smov (!%p139_p3, %s138_s15), 47 }
   0xe   : > { %v173_v19 = vld [vmem:[%s921_s14 + $0x98] sm:$0xff]  ;;  %v172_v20 = vld [vmem:[%s921_s14 + $0x90] sm:$0xff]  ;;  %v175_v21 = vld [vmem:[%s921_s14 + $0xa8] sm:$0xff]  ;;  %s872_s16 = smul.u32 56, %s1326_s15 }
   0xf   : > { %v174_v22 = vld [vmem:[%s921_s14 + $0xa0] sm:$0xff]  ;;  %v177_v23 = vld [vmem:[%s921_s14 + $0xb8] sm:$0xff]  ;;  %v176_v24 = vld [vmem:[%s921_s14 + $0xb0] sm:$0xff] }
  0x10   : > { %s952_s19 = scalar_lea.vmem %s1323_s1, %s872_s16  ;;  %s971_s22 = scalar_lea.vmem %s1324_s2, %s872_s16 }
  0x11   : > { %373 = vperm.xlu1 %883, %v159_v5   ;;  %368 = vperm.xlu0 %882, %v158_v6   ;;  %v192_v25 = vld [vmem:[%s952_s19 + $0x70] sm:$0xff]  ;;  %v193_v26 = vld [vmem:[%s952_s19 + $0x78] sm:$0xff]  ;;  %v194_v27 = vld [vmem:[%s952_s19 + $0x80] sm:$0xff] }
  0x12   : > { %v195_v28 = vld [vmem:[%s952_s19 + $0x88] sm:$0xff]  ;;  %v196_v29 = vld [vmem:[%s952_s19 + $0x90] sm:$0xff]  ;;  %v197_v30 = vld [vmem:[%s952_s19 + $0x98] sm:$0xff] }
  0x13   : > { %v198_v31 = vld [vmem:[%s952_s19 + $0xa0] sm:$0xff]  ;;  %v179_v33 = vld [vmem:[%s952_s19 + $0x8] sm:$0xff]  ;;  %v180_v34 = vld [vmem:[%s952_s19 + $0x10] sm:$0xff] }
  0x14   : > { %v178_v32 = vld [vmem:[%s952_s19] sm:$0xff]  ;;  %v181_v35 = vld [vmem:[%s952_s19 + $0x18] sm:$0xff]  ;;  %v183_v37 = vld [vmem:[%s952_s19 + $0x28] sm:$0xff] }
  0x15   : > { %383 = vperm.xlu1 %883, %v161_v7   ;;  %378 = vperm.xlu0 %882, %v160_v8   ;;  %v182_v36 = vld [vmem:[%s952_s19 + $0x20] sm:$0xff]  ;;  %v184_v38 = vld [vmem:[%s952_s19 + $0x30] sm:$0xff]  ;;  %v199_v41 = vld [vmem:[%s952_s19 + $0xa8] sm:$0xff] }
  0x16   : > { %v200_v42 = vld [vmem:[%s952_s19 + $0xb0] sm:$0xff]  ;;  %v201_v43 = vld [vmem:[%s952_s19 + $0xb8] sm:$0xff]  ;;  %v202_v44 = vld [vmem:[%s952_s19 + $0xc0] sm:$0xff] }
  0x17   : > { %v203_v49 = vld [vmem:[%s952_s19 + $0xc8] sm:$0xff]  ;;  %v204_v50 = vld [vmem:[%s952_s19 + $0xd0] sm:$0xff]  ;;  %v205_v51 = vld [vmem:[%s952_s19 + $0xd8] sm:$0xff] }
  0x18   : > { %v185_v52 = vld [vmem:[%s952_s19 + $0x38] sm:$0xff]  ;;  %v186_v57 = vld [vmem:[%s952_s19 + $0x40] sm:$0xff]  ;;  %v187_v58 = vld [vmem:[%s952_s19 + $0x48] sm:$0xff] }
  0x19   : > { %393 = vperm.xlu1 %883, %v163_v9   ;;  %388 = vperm.xlu0 %882, %v162_v10   ;;  %v188_v59 = vld [vmem:[%s952_s19 + $0x50] sm:$0xff]  ;;  %v189_v0 = vld [vmem:[%s952_s19 + $0x58] sm:$0xff]  ;;  %v190_v1 = vld [vmem:[%s952_s19 + $0x60] sm:$0xff] }
  0x1a   : > { %v191_v2 = vld [vmem:[%s952_s19 + $0x68] sm:$0xff]  ;;  %v213_v7 = vld [vmem:[%s952_s19 + $0x118] sm:$0xff]  ;;  %v214_v8 = vld [vmem:[%s952_s19 + $0x120] sm:$0xff] }
  0x1b   : > { %v215_v9 = vld [vmem:[%s952_s19 + $0x128] sm:$0xff]  ;;  %v216_v10 = vld [vmem:[%s952_s19 + $0x130] sm:$0xff] }
  0x1d   : > { %403 = vperm.xlu1 %883, %v165_v11   ;;  %398 = vperm.xlu0 %882, %v164_v12  }
  0x21   : > { %413 = vperm.xlu1 %883, %v167_v13   ;;  %408 = vperm.xlu0 %882, %v166_v14  }
  0x25   : > { %423 = vperm.xlu1 %883, %v169_v15   ;;  %418 = vperm.xlu0 %882, %v168_v16   ;;  %v217_v15 = vld [vmem:[%s952_s19 + $0x138] sm:$0xff]  ;;  %v218_v16 = vld [vmem:[%s952_s19 + $0x140] sm:$0xff] }
  0x29   : > { %433 = vperm.xlu1 %883, %v171_v17   ;;  %428 = vperm.xlu0 %882, %v170_v18   ;;  %v219_v17 = vld [vmem:[%s952_s19 + $0x148] sm:$0xff]  ;;  %v206_v18 = vld [vmem:[%s952_s19 + $0xe0] sm:$0xff] }
  0x2d   : > { %443 = vperm.xlu1 %883, %v173_v19   ;;  %438 = vperm.xlu0 %882, %v172_v20  }
  0x31   : > { %453 = vperm.xlu1 %883, %v175_v21   ;;  %448 = vperm.xlu0 %882, %v174_v22  }
  0x35   : > { %463 = vperm.xlu1 %883, %v177_v23   ;;  %458 = vperm.xlu0 %882, %v176_v24   ;;  %v207_v23 = vld [vmem:[%s952_s19 + $0xe8] sm:$0xff]  ;;  %v208_v24 = vld [vmem:[%s952_s19 + $0xf0] sm:$0xff] }
  0x88   : > { %v359_v39 = vpop.permute.xlu1 %358  ;;  %v349_v40 = vpop.permute.xlu0 %348 }
  0x89   : > { %v480_v45 = vmul.f32 %v359_v39, %v192_v25  ;;  %v481_v46 = vmul.f32 %v359_v39, %v193_v26  ;;  %v482_v47 = vmul.f32 %v359_v39, %v194_v27  ;;  %v483_v48 = vmul.f32 %v359_v39, %v195_v28  ;;  %v209_v25 = vld [vmem:[%s952_s19 + $0xf8] sm:$0xff] }
  0x8a   : > { %v484_v53 = vmul.f32 %v359_v39, %v196_v29  ;;  %v485_v54 = vmul.f32 %v359_v39, %v197_v30  ;;  %v486_v55 = vmul.f32 %v359_v39, %v198_v31  ;;  %v466_v56 = vmul.f32 %v349_v40, %v178_v32  ;;  %v210_v30 = vld [vmem:[%s952_s19 + $0x100] sm:$0xff]  ;;  %v211_v31 = vld [vmem:[%s952_s19 + $0x108] sm:$0xff]  ;;  %v212_v32 = vld [vmem:[%s952_s19 + $0x110] sm:$0xff] }
  0x8b   : > { %649 = vst [vmem:[%s971_s22 + $0x70] sm:$0xff] %v480_v45  ;;  %650 = vst [vmem:[%s971_s22 + $0x78] sm:$0xff] %v481_v46  ;;  %v467_v60 = vmul.f32 %v349_v40, %v179_v33  ;;  %v468_v61 = vmul.f32 %v349_v40, %v180_v34  ;;  %v469_v62 = vmul.f32 %v349_v40, %v181_v35  ;;  %v229_v39 = vld [vmem:[%s952_s19 + $0x198] sm:$0xff]  ;;  %v231_v45 = vld [vmem:[%s952_s19 + $0x1a8] sm:$0xff] }
  0x8c   : > { %651 = vst [vmem:[%s971_s22 + $0x80] sm:$0xff] %v482_v47  ;;  %652 = vst [vmem:[%s971_s22 + $0x88] sm:$0xff] %v483_v48  ;;  %v470_v63 = vmul.f32 %v349_v40, %v182_v36  ;;  %v471_v3 = vmul.f32 %v349_v40, %v183_v37  ;;  %v472_v4 = vmul.f32 %v349_v40, %v184_v38  ;;  %v364_v5 = vpop.permute.xlu1 %363  ;;  %v354_v6 = vpop.permute.xlu0 %353  ;;  %v227_v37 = vld [vmem:[%s952_s19 + $0x188] sm:$0xff]  ;;  %v228_v38 = vld [vmem:[%s952_s19 + $0x190] sm:$0xff] }
  0x8d   : > { %653 = vst [vmem:[%s971_s22 + $0x90] sm:$0xff] %v484_v53  ;;  %654 = vst [vmem:[%s971_s22 + $0x98] sm:$0xff] %v485_v54  ;;  %v487_v11 = vmul.f32 %v364_v5, %v199_v41  ;;  %v488_v12 = vmul.f32 %v364_v5, %v200_v42  ;;  %v489_v13 = vmul.f32 %v364_v5, %v201_v43  ;;  %v230_v40 = vld [vmem:[%s952_s19 + $0x1a0] sm:$0xff]  ;;  %v232_v46 = vld [vmem:[%s952_s19 + $0x1b0] sm:$0xff] }
  0x8e   : > { %655 = vst.msk [vmem:[%s971_s22 + $0xa0] sm:$0xff] %vm640_vm0, %v486_v55  ;;  %634 = vst [vmem:[%s971_s22] sm:$0xff] %v466_v56  ;;  %v490_v14 = vmul.f32 %v364_v5, %v202_v44  ;;  %v491_v19 = vmul.f32 %v364_v5, %v203_v49  ;;  %v492_v20 = vmul.f32 %v364_v5, %v204_v50  ;;  %v233_v47 = vld [vmem:[%s952_s19 + $0x1b8] sm:$0xff]  ;;  %v220_v48 = vld [vmem:[%s952_s19 + $0x150] sm:$0xff] }
  0x8f   : > { %635 = vst [vmem:[%s971_s22 + $0x8] sm:$0xff] %v467_v60  ;;  %636 = vst [vmem:[%s971_s22 + $0x10] sm:$0xff] %v468_v61  ;;  %v493_v21 = vmul.f32 %v364_v5, %v205_v51  ;;  %v473_v22 = vmul.f32 %v354_v6, %v185_v52  ;;  %v474_v26 = vmul.f32 %v354_v6, %v186_v57  ;;  %v221_v53 = vld [vmem:[%s952_s19 + $0x158] sm:$0xff]  ;;  %v222_v54 = vld [vmem:[%s952_s19 + $0x160] sm:$0xff] }
  0x90   : > { %637 = vst [vmem:[%s971_s22 + $0x18] sm:$0xff] %v469_v62  ;;  %638 = vst [vmem:[%s971_s22 + $0x20] sm:$0xff] %v470_v63  ;;  %v475_v27 = vmul.f32 %v354_v6, %v187_v58  ;;  %v476_v28 = vmul.f32 %v354_v6, %v188_v59  ;;  %v477_v29 = vmul.f32 %v354_v6, %v189_v0  ;;  %v374_v35 = vpop.permute.xlu1 %373  ;;  %v369_v36 = vpop.permute.xlu0 %368  ;;  %v223_v55 = vld [vmem:[%s952_s19 + $0x168] sm:$0xff]  ;;  %v224_v60 = vld [vmem:[%s952_s19 + $0x170] sm:$0xff] }
  0x91   : > { %639 = vst [vmem:[%s971_s22 + $0x28] sm:$0xff] %v471_v3  ;;  %641 = vst.msk [vmem:[%s971_s22 + $0x30] sm:$0xff] %vm640_vm0, %v472_v4  ;;  %v478_v33 = vmul.f32 %v354_v6, %v190_v1  ;;  %v479_v34 = vmul.f32 %v354_v6, %v191_v2  ;;  %v501_v41 = vmul.f32 %v374_v35, %v213_v7  ;;  %v225_v61 = vld [vmem:[%s952_s19 + $0x178] sm:$0xff]  ;;  %v226_v62 = vld [vmem:[%s952_s19 + $0x180] sm:$0xff] }
  0x92   : > { %656 = vst [vmem:[%s971_s22 + $0xa8] sm:$0xff] %v487_v11  ;;  %657 = vst [vmem:[%s971_s22 + $0xb0] sm:$0xff] %v488_v12  ;;  %v502_v42 = vmul.f32 %v374_v35, %v214_v8  ;;  %v503_v43 = vmul.f32 %v374_v35, %v215_v9  ;;  %v504_v44 = vmul.f32 %v374_v35, %v216_v10  ;;  %v241_v3 = vld [vmem:[%s952_s19 + $0x1f8] sm:$0xff]  ;;  %v242_v4 = vld [vmem:[%s952_s19 + $0x200] sm:$0xff] }
  0x93   : > { %658 = vst [vmem:[%s971_s22 + $0xb8] sm:$0xff] %v489_v13  ;;  %659 = vst [vmem:[%s971_s22 + $0xc0] sm:$0xff] %v490_v14  ;;  %v505_v49 = vmul.f32 %v374_v35, %v217_v15  ;;  %v506_v50 = vmul.f32 %v374_v35, %v218_v16  ;;  %v507_v51 = vmul.f32 %v374_v35, %v219_v17  ;;  %v243_v5 = vld [vmem:[%s952_s19 + $0x208] sm:$0xff]  ;;  %v244_v6 = vld [vmem:[%s952_s19 + $0x210] sm:$0xff] }
  0x94   : > { %660 = vst [vmem:[%s971_s22 + $0xc8] sm:$0xff] %v491_v19  ;;  %661 = vst [vmem:[%s971_s22 + $0xd0] sm:$0xff] %v492_v20  ;;  %v494_v52 = vmul.f32 %v369_v36, %v206_v18  ;;  %v495_v56 = vmul.f32 %v369_v36, %v207_v23  ;;  %v496_v57 = vmul.f32 %v369_v36, %v208_v24  ;;  %v384_v1 = vpop.permute.xlu1 %383  ;;  %v379_v2 = vpop.permute.xlu0 %378  ;;  %v245_v11 = vld [vmem:[%s952_s19 + $0x218] sm:$0xff]  ;;  %v246_v12 = vld [vmem:[%s952_s19 + $0x220] sm:$0xff] }
  0x95   : > { %662 = vst.msk [vmem:[%s971_s22 + $0xd8] sm:$0xff] %vm640_vm0, %v493_v21  ;;  %642 = vst [vmem:[%s971_s22 + $0x38] sm:$0xff] %v473_v22  ;;  %v497_v58 = vmul.f32 %v369_v36, %v209_v25  ;;  %v498_v59 = vmul.f32 %v369_v36, %v210_v30  ;;  %v499_v63 = vmul.f32 %v369_v36, %v211_v31  ;;  %v247_v13 = vld [vmem:[%s952_s19 + $0x228] sm:$0xff]  ;;  %v234_v14 = vld [vmem:[%s952_s19 + $0x1c0] sm:$0xff] }
  0x96   : > { %643 = vst [vmem:[%s971_s22 + $0x40] sm:$0xff] %v474_v26  ;;  %644 = vst [vmem:[%s971_s22 + $0x48] sm:$0xff] %v475_v27  ;;  %v500_v0 = vmul.f32 %v369_v36, %v212_v32  ;;  %v515_v7 = vmul.f32 %v384_v1, %v227_v37  ;;  %v516_v8 = vmul.f32 %v384_v1, %v228_v38  ;;  %v235_v19 = vld [vmem:[%s952_s19 + $0x1c8] sm:$0xff]  ;;  %v236_v20 = vld [vmem:[%s952_s19 + $0x1d0] sm:$0xff] }
  0x97   : > { %645 = vst [vmem:[%s971_s22 + $0x50] sm:$0xff] %v476_v28  ;;  %646 = vst [vmem:[%s971_s22 + $0x58] sm:$0xff] %v477_v29  ;;  %v517_v9 = vmul.f32 %v384_v1, %v229_v39  ;;  %v518_v10 = vmul.f32 %v384_v1, %v230_v40  ;;  %v519_v15 = vmul.f32 %v384_v1, %v231_v45  ;;  %v237_v21 = vld [vmem:[%s952_s19 + $0x1d8] sm:$0xff]  ;;  %v238_v26 = vld [vmem:[%s952_s19 + $0x1e0] sm:$0xff] }
  0x98   : > { %647 = vst [vmem:[%s971_s22 + $0x60] sm:$0xff] %v478_v33  ;;  %648 = vst.msk [vmem:[%s971_s22 + $0x68] sm:$0xff] %vm640_vm0, %v479_v34  ;;  %v520_v16 = vmul.f32 %v384_v1, %v232_v46  ;;  %v521_v17 = vmul.f32 %v384_v1, %v233_v47  ;;  %v508_v18 = vmul.f32 %v379_v2, %v220_v48  ;;  %v239_v27 = vld [vmem:[%s952_s19 + $0x1e8] sm:$0xff]  ;;  %v240_v28 = vld [vmem:[%s952_s19 + $0x1f0] sm:$0xff]  ;;  %v394_v31 = vpop.permute.xlu1 %393  ;;  %v389_v32 = vpop.permute.xlu0 %388 }
  0x99   : > { %670 = vst [vmem:[%s971_s22 + $0x118] sm:$0xff] %v501_v41  ;;  %671 = vst [vmem:[%s971_s22 + $0x120] sm:$0xff] %v502_v42  ;;  %v509_v22 = vmul.f32 %v379_v2, %v221_v53  ;;  %v510_v23 = vmul.f32 %v379_v2, %v222_v54  ;;  %v511_v24 = vmul.f32 %v379_v2, %v223_v55  ;;  %v255_v33 = vld [vmem:[%s952_s19 + $0x268] sm:$0xff]  ;;  %v256_v34 = vld [vmem:[%s952_s19 + $0x270] sm:$0xff] }
  0x9a   : > { %672 = vst [vmem:[%s971_s22 + $0x128] sm:$0xff] %v503_v43  ;;  %673 = vst [vmem:[%s971_s22 + $0x130] sm:$0xff] %v504_v44  ;;  %v512_v25 = vmul.f32 %v379_v2, %v224_v60  ;;  %v513_v29 = vmul.f32 %v379_v2, %v225_v61  ;;  %v514_v30 = vmul.f32 %v379_v2, %v226_v62  ;;  %v257_v35 = vld [vmem:[%s952_s19 + $0x278] sm:$0xff]  ;;  %v258_v36 = vld [vmem:[%s952_s19 + $0x280] sm:$0xff] }
  0x9b   : > { %674 = vst [vmem:[%s971_s22 + $0x138] sm:$0xff] %v505_v49  ;;  %675 = vst [vmem:[%s971_s22 + $0x140] sm:$0xff] %v506_v50  ;;  %v529_v37 = vmul.f32 %v394_v31, %v241_v3  ;;  %v530_v38 = vmul.f32 %v394_v31, %v242_v4  ;;  %v531_v39 = vmul.f32 %v394_v31, %v243_v5  ;;  %v259_v41 = vld [vmem:[%s952_s19 + $0x288] sm:$0xff]  ;;  %v260_v42 = vld [vmem:[%s952_s19 + $0x290] sm:$0xff] }
  0x9c   : > { %676 = vst.msk [vmem:[%s971_s22 + $0x148] sm:$0xff] %vm640_vm0, %v507_v51  ;;  %663 = vst [vmem:[%s971_s22 + $0xe0] sm:$0xff] %v494_v52  ;;  %v532_v40 = vmul.f32 %v394_v31, %v244_v6  ;;  %v261_v43 = vld [vmem:[%s952_s19 + $0x298] sm:$0xff]  ;;  %v248_v44 = vld [vmem:[%s952_s19 + $0x230] sm:$0xff]  ;;  %v533_v45 = vmul.f32 %v394_v31, %v245_v11  ;;  %v534_v46 = vmul.f32 %v394_v31, %v246_v12  ;;  %v404_v61 = vpop.permute.xlu1 %403  ;;  %v399_v62 = vpop.permute.xlu0 %398 }
  0x9d   : > { %664 = vst [vmem:[%s971_s22 + $0xe8] sm:$0xff] %v495_v56  ;;  %665 = vst [vmem:[%s971_s22 + $0xf0] sm:$0xff] %v496_v57  ;;  %v535_v47 = vmul.f32 %v394_v31, %v247_v13  ;;  %v522_v48 = vmul.f32 %v389_v32, %v234_v14  ;;  %v249_v49 = vld [vmem:[%s952_s19 + $0x238] sm:$0xff]  ;;  %v250_v50 = vld [vmem:[%s952_s19 + $0x240] sm:$0xff]  ;;  %v523_v52 = vmul.f32 %v389_v32, %v235_v19 }
  0x9e   : > { %666 = vst [vmem:[%s971_s22 + $0xf8] sm:$0xff] %v497_v58  ;;  %667 = vst [vmem:[%s971_s22 + $0x100] sm:$0xff] %v498_v59  ;;  %v251_v51 = vld [vmem:[%s952_s19 + $0x248] sm:$0xff]  ;;  %v524_v53 = vmul.f32 %v389_v32, %v236_v20  ;;  %v525_v54 = vmul.f32 %v389_v32, %v237_v21  ;;  %v526_v55 = vmul.f32 %v389_v32, %v238_v26  ;;  %v252_v56 = vld [vmem:[%s952_s19 + $0x250] sm:$0xff] }
  0x9f   : > { %668 = vst [vmem:[%s971_s22 + $0x108] sm:$0xff] %v499_v63  ;;  %669 = vst.msk [vmem:[%s971_s22 + $0x110] sm:$0xff] %vm640_vm0, %v500_v0  ;;  %v253_v57 = vld [vmem:[%s952_s19 + $0x258] sm:$0xff]  ;;  %v254_v58 = vld [vmem:[%s952_s19 + $0x260] sm:$0xff]  ;;  %v527_v59 = vmul.f32 %v389_v32, %v239_v27  ;;  %v528_v60 = vmul.f32 %v389_v32, %v240_v28  ;;  %v543_v3 = vmul.f32 %v404_v61, %v255_v33 }
  0xa0   : > { %684 = vst [vmem:[%s971_s22 + $0x188] sm:$0xff] %v515_v7  ;;  %685 = vst [vmem:[%s971_s22 + $0x190] sm:$0xff] %v516_v8  ;;  %v269_v63 = vld [vmem:[%s952_s19 + $0x2d8] sm:$0xff]  ;;  %v270_v0 = vld [vmem:[%s952_s19 + $0x2e0] sm:$0xff]  ;;  %v544_v4 = vmul.f32 %v404_v61, %v256_v34  ;;  %v545_v5 = vmul.f32 %v404_v61, %v257_v35  ;;  %v546_v6 = vmul.f32 %v404_v61, %v258_v36  ;;  %v414_v27 = vpop.permute.xlu1 %413  ;;  %v409_v28 = vpop.permute.xlu0 %408 }
  0xa1   : > { %686 = vst [vmem:[%s971_s22 + $0x198] sm:$0xff] %v517_v9  ;;  %687 = vst [vmem:[%s971_s22 + $0x1a0] sm:$0xff] %v518_v10  ;;  %v271_v1 = vld [vmem:[%s952_s19 + $0x2e8] sm:$0xff]  ;;  %v272_v2 = vld [vmem:[%s952_s19 + $0x2f0] sm:$0xff]  ;;  %v547_v11 = vmul.f32 %v404_v61, %v259_v41  ;;  %v548_v12 = vmul.f32 %v404_v61, %v260_v42  ;;  %v549_v13 = vmul.f32 %v404_v61, %v261_v43 }
  0xa2   : > { %688 = vst [vmem:[%s971_s22 + $0x1a8] sm:$0xff] %v519_v15  ;;  %689 = vst [vmem:[%s971_s22 + $0x1b0] sm:$0xff] %v520_v16  ;;  %v273_v7 = vld [vmem:[%s952_s19 + $0x2f8] sm:$0xff]  ;;  %v274_v8 = vld [vmem:[%s952_s19 + $0x300] sm:$0xff]  ;;  %v536_v14 = vmul.f32 %v399_v62, %v248_v44  ;;  %v538_v19 = vmul.f32 %v399_v62, %v250_v50  ;;  %v539_v20 = vmul.f32 %v399_v62, %v251_v51 }
  0xa3   : > { %690 = vst.msk [vmem:[%s971_s22 + $0x1b8] sm:$0xff] %vm640_vm0, %v521_v17  ;;  %677 = vst [vmem:[%s971_s22 + $0x150] sm:$0xff] %v508_v18  ;;  %v275_v9 = vld [vmem:[%s952_s19 + $0x308] sm:$0xff]  ;;  %v262_v10 = vld [vmem:[%s952_s19 + $0x2a0] sm:$0xff]  ;;  %v537_v18 = vmul.f32 %v399_v62, %v249_v49  ;;  %v540_v21 = vmul.f32 %v399_v62, %v252_v56  ;;  %v542_v26 = vmul.f32 %v399_v62, %v254_v58 }
  0xa4   : > { %678 = vst [vmem:[%s971_s22 + $0x158] sm:$0xff] %v509_v22  ;;  %679 = vst [vmem:[%s971_s22 + $0x160] sm:$0xff] %v510_v23  ;;  %v263_v15 = vld [vmem:[%s952_s19 + $0x2a8] sm:$0xff]  ;;  %v264_v16 = vld [vmem:[%s952_s19 + $0x2b0] sm:$0xff]  ;;  %v557_v33 = vmul.f32 %v414_v27, %v269_v63  ;;  %v558_v34 = vmul.f32 %v414_v27, %v270_v0  ;;  %v559_v35 = vmul.f32 %v414_v27, %v271_v1  ;;  %v419_v58 = vpop.permute.xlu0 %418 }
  0xa5   : > { %680 = vst [vmem:[%s971_s22 + $0x168] sm:$0xff] %v511_v24  ;;  %681 = vst [vmem:[%s971_s22 + $0x170] sm:$0xff] %v512_v25  ;;  %v265_v17 = vld [vmem:[%s952_s19 + $0x2b8] sm:$0xff]  ;;  %v266_v22 = vld [vmem:[%s952_s19 + $0x2c0] sm:$0xff]  ;;  %v541_v25 = vmul.f32 %v399_v62, %v253_v57  ;;  %v560_v36 = vmul.f32 %v414_v27, %v272_v2  ;;  %v561_v41 = vmul.f32 %v414_v27, %v273_v7  ;;  %v424_v57 = vpop.permute.xlu1 %423 }
  0xa6   : > { %682 = vst [vmem:[%s971_s22 + $0x178] sm:$0xff] %v513_v29  ;;  %683 = vst.msk [vmem:[%s971_s22 + $0x180] sm:$0xff] %vm640_vm0, %v514_v30  ;;  %v267_v23 = vld [vmem:[%s952_s19 + $0x2c8] sm:$0xff]  ;;  %v268_v24 = vld [vmem:[%s952_s19 + $0x2d0] sm:$0xff]  ;;  %v562_v42 = vmul.f32 %v414_v27, %v274_v8  ;;  %v563_v43 = vmul.f32 %v414_v27, %v275_v9  ;;  %v550_v44 = vmul.f32 %v409_v28, %v262_v10 }
  0xa7   : > { %698 = vst [vmem:[%s971_s22 + $0x1f8] sm:$0xff] %v529_v37  ;;  %699 = vst [vmem:[%s971_s22 + $0x200] sm:$0xff] %v530_v38  ;;  %v283_v29 = vld [vmem:[%s952_s19 + $0x348] sm:$0xff]  ;;  %v284_v30 = vld [vmem:[%s952_s19 + $0x350] sm:$0xff]  ;;  %v552_v49 = vmul.f32 %v409_v28, %v264_v16  ;;  %v553_v50 = vmul.f32 %v409_v28, %v265_v17  ;;  %v554_v51 = vmul.f32 %v409_v28, %v266_v22 }
  0xa8   : > { %700 = vst [vmem:[%s971_s22 + $0x208] sm:$0xff] %v531_v39  ;;  %701 = vst [vmem:[%s971_s22 + $0x210] sm:$0xff] %v532_v40  ;;  %v285_v31 = vld [vmem:[%s952_s19 + $0x358] sm:$0xff]  ;;  %v286_v32 = vld [vmem:[%s952_s19 + $0x360] sm:$0xff]  ;;  %v556_v56 = vmul.f32 %v409_v28, %v268_v24  ;;  %v571_v63 = vmul.f32 %v424_v57, %v283_v29  ;;  %v572_v0 = vmul.f32 %v424_v57, %v284_v30  ;;  %v429_v24 = vpop.permute.xlu0 %428 }
  0xa9   : > { %702 = vst [vmem:[%s971_s22 + $0x218] sm:$0xff] %v533_v45  ;;  %703 = vst [vmem:[%s971_s22 + $0x220] sm:$0xff] %v534_v46  ;;  %v287_v37 = vld [vmem:[%s952_s19 + $0x368] sm:$0xff]  ;;  %v288_v38 = vld [vmem:[%s952_s19 + $0x370] sm:$0xff]  ;;  %v573_v1 = vmul.f32 %v424_v57, %v285_v31  ;;  %v574_v2 = vmul.f32 %v424_v57, %v286_v32 }
  0xaa   : > { %704 = vst.msk [vmem:[%s971_s22 + $0x228] sm:$0xff] %vm640_vm0, %v535_v47  ;;  %691 = vst [vmem:[%s971_s22 + $0x1c0] sm:$0xff] %v522_v48  ;;  %v289_v39 = vld [vmem:[%s952_s19 + $0x378] sm:$0xff]  ;;  %v276_v40 = vld [vmem:[%s952_s19 + $0x310] sm:$0xff]  ;;  %v551_v48 = vmul.f32 %v409_v28, %v263_v15  ;;  %v575_v7 = vmul.f32 %v424_v57, %v287_v37  ;;  %v576_v8 = vmul.f32 %v424_v57, %v288_v38 }
  0xab   : > { %692 = vst [vmem:[%s971_s22 + $0x1c8] sm:$0xff] %v523_v52  ;;  %693 = vst [vmem:[%s971_s22 + $0x1d0] sm:$0xff] %v524_v53  ;;  %v277_v45 = vld [vmem:[%s952_s19 + $0x318] sm:$0xff]  ;;  %v278_v46 = vld [vmem:[%s952_s19 + $0x320] sm:$0xff]  ;;  %v577_v9 = vmul.f32 %v424_v57, %v289_v39  ;;  %v564_v10 = vmul.f32 %v419_v58, %v276_v40 }
  0xac   : > { %694 = vst [vmem:[%s971_s22 + $0x1d8] sm:$0xff] %v525_v54  ;;  %695 = vst [vmem:[%s971_s22 + $0x1e0] sm:$0xff] %v526_v55  ;;  %v279_v47 = vld [vmem:[%s952_s19 + $0x328] sm:$0xff]  ;;  %v280_v52 = vld [vmem:[%s952_s19 + $0x330] sm:$0xff]  ;;  %v555_v55 = vmul.f32 %v409_v28, %v267_v23  ;;  %v566_v15 = vmul.f32 %v419_v58, %v278_v46  ;;  %v434_v23 = vpop.permute.xlu1 %433 }
  0xad   : > { %696 = vst [vmem:[%s971_s22 + $0x1e8] sm:$0xff] %v527_v59  ;;  %697 = vst.msk [vmem:[%s971_s22 + $0x1f0] sm:$0xff] %vm640_vm0, %v528_v60  ;;  %v281_v53 = vld [vmem:[%s952_s19 + $0x338] sm:$0xff]  ;;  %v282_v54 = vld [vmem:[%s952_s19 + $0x340] sm:$0xff]  ;;  %v567_v16 = vmul.f32 %v419_v58, %v279_v47  ;;  %v568_v17 = vmul.f32 %v419_v58, %v280_v52 }
  0xae   : > { %712 = vst [vmem:[%s971_s22 + $0x268] sm:$0xff] %v543_v3  ;;  %713 = vst [vmem:[%s971_s22 + $0x270] sm:$0xff] %v544_v4  ;;  %v297_v59 = vld [vmem:[%s952_s19 + $0x3b8] sm:$0xff]  ;;  %v298_v60 = vld [vmem:[%s952_s19 + $0x3c0] sm:$0xff]  ;;  %v570_v22 = vmul.f32 %v419_v58, %v282_v54 }
  0xaf   : > { %714 = vst [vmem:[%s971_s22 + $0x278] sm:$0xff] %v545_v5  ;;  %715 = vst [vmem:[%s971_s22 + $0x280] sm:$0xff] %v546_v6  ;;  %v299_v61 = vld [vmem:[%s952_s19 + $0x3c8] sm:$0xff]  ;;  %v300_v62 = vld [vmem:[%s952_s19 + $0x3d0] sm:$0xff]  ;;  %v585_v29 = vmul.f32 %v434_v23, %v297_v59  ;;  %v586_v30 = vmul.f32 %v434_v23, %v298_v60 }
  0xb0   : > { %716 = vst [vmem:[%s971_s22 + $0x288] sm:$0xff] %v547_v11  ;;  %717 = vst [vmem:[%s971_s22 + $0x290] sm:$0xff] %v548_v12  ;;  %v301_v3 = vld [vmem:[%s952_s19 + $0x3d8] sm:$0xff]  ;;  %v302_v4 = vld [vmem:[%s952_s19 + $0x3e0] sm:$0xff]  ;;  %v587_v31 = vmul.f32 %v434_v23, %v299_v61  ;;  %v588_v32 = vmul.f32 %v434_v23, %v300_v62  ;;  %v444_v52 = vpop.permute.xlu1 %443 }
  0xb1   : > { %718 = vst.msk [vmem:[%s971_s22 + $0x298] sm:$0xff] %vm640_vm0, %v549_v13  ;;  %705 = vst [vmem:[%s971_s22 + $0x230] sm:$0xff] %v536_v14  ;;  %v303_v5 = vld [vmem:[%s952_s19 + $0x3e8] sm:$0xff]  ;;  %v290_v6 = vld [vmem:[%s952_s19 + $0x380] sm:$0xff]  ;;  %v565_v14 = vmul.f32 %v419_v58, %v277_v45  ;;  %v590_v37 = vmul.f32 %v434_v23, %v302_v4 }
  0xb2   : > { %706 = vst [vmem:[%s971_s22 + $0x238] sm:$0xff] %v537_v18  ;;  %707 = vst [vmem:[%s971_s22 + $0x240] sm:$0xff] %v538_v19  ;;  %v291_v11 = vld [vmem:[%s952_s19 + $0x388] sm:$0xff]  ;;  %v292_v12 = vld [vmem:[%s952_s19 + $0x390] sm:$0xff]  ;;  %v591_v38 = vmul.f32 %v434_v23, %v303_v5  ;;  %v578_v39 = vmul.f32 %v429_v24, %v290_v6 }
  0xb3   : > { %708 = vst [vmem:[%s971_s22 + $0x248] sm:$0xff] %v539_v20  ;;  %709 = vst [vmem:[%s971_s22 + $0x250] sm:$0xff] %v540_v21  ;;  %v293_v13 = vld [vmem:[%s952_s19 + $0x398] sm:$0xff]  ;;  %v294_v18 = vld [vmem:[%s952_s19 + $0x3a0] sm:$0xff]  ;;  %v569_v21 = vmul.f32 %v419_v58, %v281_v53  ;;  %v439_v53 = vpop.permute.xlu0 %438 }
  0xb4   : > { %710 = vst [vmem:[%s971_s22 + $0x258] sm:$0xff] %v541_v25  ;;  %711 = vst.msk [vmem:[%s971_s22 + $0x260] sm:$0xff] %vm640_vm0, %v542_v26  ;;  %v295_v19 = vld [vmem:[%s952_s19 + $0x3a8] sm:$0xff]  ;;  %v296_v20 = vld [vmem:[%s952_s19 + $0x3b0] sm:$0xff]  ;;  %v581_v45 = vmul.f32 %v429_v24, %v293_v13  ;;  %v582_v46 = vmul.f32 %v429_v24, %v294_v18 }
  0xb5   : > { %726 = vst [vmem:[%s971_s22 + $0x2d8] sm:$0xff] %v557_v33  ;;  %727 = vst [vmem:[%s971_s22 + $0x2e0] sm:$0xff] %v558_v34  ;;  %v311_v25 = vld [vmem:[%s952_s19 + $0x428] sm:$0xff]  ;;  %v312_v26 = vld [vmem:[%s952_s19 + $0x430] sm:$0xff] }
  0xb6   : > { %728 = vst [vmem:[%s971_s22 + $0x2e8] sm:$0xff] %v559_v35  ;;  %729 = vst [vmem:[%s971_s22 + $0x2f0] sm:$0xff] %v560_v36  ;;  %v313_v27 = vld [vmem:[%s952_s19 + $0x438] sm:$0xff]  ;;  %v314_v28 = vld [vmem:[%s952_s19 + $0x440] sm:$0xff]  ;;  %v589_v36 = vmul.f32 %v434_v23, %v301_v3  ;;  %v599_v57 = vmul.f32 %v444_v52, %v311_v25  ;;  %v600_v58 = vmul.f32 %v444_v52, %v312_v26 }
  0xb7   : > { %730 = vst [vmem:[%s971_s22 + $0x2f8] sm:$0xff] %v561_v41  ;;  %731 = vst [vmem:[%s971_s22 + $0x300] sm:$0xff] %v562_v42  ;;  %v315_v33 = vld [vmem:[%s952_s19 + $0x448] sm:$0xff]  ;;  %v316_v34 = vld [vmem:[%s952_s19 + $0x450] sm:$0xff]  ;;  %v601_v59 = vmul.f32 %v444_v52, %v313_v27  ;;  %v602_v60 = vmul.f32 %v444_v52, %v314_v28 }
  0xb8   : > { %732 = vst.msk [vmem:[%s971_s22 + $0x308] sm:$0xff] %vm640_vm0, %v563_v43  ;;  %719 = vst [vmem:[%s971_s22 + $0x2a0] sm:$0xff] %v550_v44  ;;  %v317_v35 = vld [vmem:[%s952_s19 + $0x458] sm:$0xff]  ;;  %v304_v40 = vld [vmem:[%s952_s19 + $0x3f0] sm:$0xff]  ;;  %v579_v43 = vmul.f32 %v429_v24, %v291_v11  ;;  %v580_v44 = vmul.f32 %v429_v24, %v292_v12 }
  0xb9   : > { %720 = vst [vmem:[%s971_s22 + $0x2a8] sm:$0xff] %v551_v48  ;;  %721 = vst [vmem:[%s971_s22 + $0x2b0] sm:$0xff] %v552_v49  ;;  %v305_v41 = vld [vmem:[%s952_s19 + $0x3f8] sm:$0xff]  ;;  %v306_v42 = vld [vmem:[%s952_s19 + $0x400] sm:$0xff]  ;;  %v592_v3 = vmul.f32 %v439_v53, %v304_v40 }
  0xba   : > { %722 = vst [vmem:[%s971_s22 + $0x2b8] sm:$0xff] %v553_v50  ;;  %723 = vst [vmem:[%s971_s22 + $0x2c0] sm:$0xff] %v554_v51  ;;  %v307_v47 = vld [vmem:[%s952_s19 + $0x408] sm:$0xff]  ;;  %v308_v48 = vld [vmem:[%s952_s19 + $0x410] sm:$0xff]  ;;  %v583_v50 = vmul.f32 %v429_v24, %v295_v19  ;;  %v584_v51 = vmul.f32 %v429_v24, %v296_v20 }
  0xbb   : > { %724 = vst [vmem:[%s971_s22 + $0x2c8] sm:$0xff] %v555_v55  ;;  %725 = vst.msk [vmem:[%s971_s22 + $0x2d0] sm:$0xff] %vm640_vm0, %v556_v56  ;;  %v309_v49 = vld [vmem:[%s952_s19 + $0x418] sm:$0xff]  ;;  %v310_v54 = vld [vmem:[%s952_s19 + $0x420] sm:$0xff] }
  0xbc   : > { %740 = vst [vmem:[%s971_s22 + $0x348] sm:$0xff] %v571_v63  ;;  %741 = vst [vmem:[%s971_s22 + $0x350] sm:$0xff] %v572_v0  ;;  %v325_v55 = vld [vmem:[%s952_s19 + $0x498] sm:$0xff]  ;;  %v326_v56 = vld [vmem:[%s952_s19 + $0x4a0] sm:$0xff]  ;;  %v603_v0 = vmul.f32 %v444_v52, %v315_v33 }
  0xbd   : > { %742 = vst [vmem:[%s971_s22 + $0x358] sm:$0xff] %v573_v1  ;;  %743 = vst [vmem:[%s971_s22 + $0x360] sm:$0xff] %v574_v2  ;;  %v327_v61 = vld [vmem:[%s952_s19 + $0x4a8] sm:$0xff]  ;;  %v328_v62 = vld [vmem:[%s952_s19 + $0x4b0] sm:$0xff]  ;;  %v604_v1 = vmul.f32 %v444_v52, %v316_v34  ;;  %v605_v2 = vmul.f32 %v444_v52, %v317_v35 }
  0xbe   : > { %744 = vst [vmem:[%s971_s22 + $0x368] sm:$0xff] %v575_v7  ;;  %745 = vst [vmem:[%s971_s22 + $0x370] sm:$0xff] %v576_v8  ;;  %v329_v63 = vld [vmem:[%s952_s19 + $0x4b8] sm:$0xff]  ;;  %v330_v4 = vld [vmem:[%s952_s19 + $0x4c0] sm:$0xff]  ;;  %v593_v7 = vmul.f32 %v439_v53, %v305_v41  ;;  %v594_v8 = vmul.f32 %v439_v53, %v306_v42 }
  0xbf   : > { %746 = vst.msk [vmem:[%s971_s22 + $0x378] sm:$0xff] %vm640_vm0, %v577_v9  ;;  %733 = vst [vmem:[%s971_s22 + $0x310] sm:$0xff] %v564_v10  ;;  %v331_v5 = vld [vmem:[%s952_s19 + $0x4c8] sm:$0xff]  ;;  %v318_v6 = vld [vmem:[%s952_s19 + $0x460] sm:$0xff]  ;;  %v595_v9 = vmul.f32 %v439_v53, %v307_v47  ;;  %v596_v10 = vmul.f32 %v439_v53, %v308_v48 }
  0xc0   : > { %734 = vst [vmem:[%s971_s22 + $0x318] sm:$0xff] %v565_v14  ;;  %735 = vst [vmem:[%s971_s22 + $0x320] sm:$0xff] %v566_v15  ;;  %v319_v11 = vld [vmem:[%s952_s19 + $0x468] sm:$0xff]  ;;  %v320_v12 = vld [vmem:[%s952_s19 + $0x470] sm:$0xff]  ;;  %v597_v14 = vmul.f32 %v439_v53, %v309_v49  ;;  %v598_v15 = vmul.f32 %v439_v53, %v310_v54 }
  0xc1   : > { %736 = vst [vmem:[%s971_s22 + $0x328] sm:$0xff] %v567_v16  ;;  %737 = vst [vmem:[%s971_s22 + $0x330] sm:$0xff] %v568_v17  ;;  %v321_v13 = vld [vmem:[%s952_s19 + $0x478] sm:$0xff]  ;;  %v454_v16 = vpop.permute.xlu1 %453  ;;  %v449_v17 = vpop.permute.xlu0 %448  ;;  %v322_v18 = vld [vmem:[%s952_s19 + $0x480] sm:$0xff] }
  0xc2   : > { %738 = vst [vmem:[%s971_s22 + $0x338] sm:$0xff] %v569_v21  ;;  %739 = vst.msk [vmem:[%s971_s22 + $0x340] sm:$0xff] %vm640_vm0, %v570_v22  ;;  %v323_v19 = vld [vmem:[%s952_s19 + $0x488] sm:$0xff]  ;;  %v324_v20 = vld [vmem:[%s952_s19 + $0x490] sm:$0xff]  ;;  %v613_v21 = vmul.f32 %v454_v16, %v325_v55  ;;  %v614_v22 = vmul.f32 %v454_v16, %v326_v56  ;;  %v615_v23 = vmul.f32 %v454_v16, %v327_v61 }
  0xc3   : > { %754 = vst [vmem:[%s971_s22 + $0x3b8] sm:$0xff] %v585_v29  ;;  %755 = vst [vmem:[%s971_s22 + $0x3c0] sm:$0xff] %v586_v30  ;;  %v616_v24 = vmul.f32 %v454_v16, %v328_v62  ;;  %v339_v25 = vld [vmem:[%s952_s19 + $0x508] sm:$0xff]  ;;  %v340_v26 = vld [vmem:[%s952_s19 + $0x510] sm:$0xff]  ;;  %v617_v28 = vmul.f32 %v454_v16, %v329_v63  ;;  %v618_v29 = vmul.f32 %v454_v16, %v330_v4 }
  0xc4   : > { %756 = vst [vmem:[%s971_s22 + $0x3c8] sm:$0xff] %v587_v31  ;;  %757 = vst [vmem:[%s971_s22 + $0x3d0] sm:$0xff] %v588_v32  ;;  %v341_v27 = vld [vmem:[%s952_s19 + $0x518] sm:$0xff]  ;;  %v619_v30 = vmul.f32 %v454_v16, %v331_v5  ;;  %v606_v31 = vmul.f32 %v449_v17, %v318_v6  ;;  %v342_v32 = vld [vmem:[%s952_s19 + $0x520] sm:$0xff]  ;;  %v607_v35 = vmul.f32 %v449_v17, %v319_v11 }
  0xc5   : > { %758 = vst [vmem:[%s971_s22 + $0x3d8] sm:$0xff] %v589_v36  ;;  %759 = vst [vmem:[%s971_s22 + $0x3e0] sm:$0xff] %v590_v37  ;;  %v343_v33 = vld [vmem:[%s952_s19 + $0x528] sm:$0xff]  ;;  %v344_v34 = vld [vmem:[%s952_s19 + $0x530] sm:$0xff]  ;;  %v608_v36 = vmul.f32 %v449_v17, %v320_v12  ;;  %v609_v37 = vmul.f32 %v449_v17, %v321_v13  ;;  %v611_v42 = vmul.f32 %v449_v17, %v323_v19 }
  0xc6   : > { %760 = vst.msk [vmem:[%s971_s22 + $0x3e8] sm:$0xff] %vm640_vm0, %v591_v38  ;;  %747 = vst [vmem:[%s971_s22 + $0x380] sm:$0xff] %v578_v39  ;;  %v610_v38 = vmul.f32 %v449_v17, %v322_v18  ;;  %v345_v39 = vld [vmem:[%s952_s19 + $0x538] sm:$0xff]  ;;  %v332_v40 = vld [vmem:[%s952_s19 + $0x4d0] sm:$0xff] }
  0xc7   : > { %748 = vst [vmem:[%s971_s22 + $0x388] sm:$0xff] %v579_v43  ;;  %749 = vst [vmem:[%s971_s22 + $0x390] sm:$0xff] %v580_v44  ;;  %v333_v41 = vld [vmem:[%s952_s19 + $0x4d8] sm:$0xff]  ;;  %v612_v43 = vmul.f32 %v449_v17, %v324_v20  ;;  %v464_v44 = vpop.permute.xlu1 %463  ;;  %v335_v47 = vld [vmem:[%s952_s19 + $0x4e8] sm:$0xff] }
  0xc8   : > { %750 = vst [vmem:[%s971_s22 + $0x398] sm:$0xff] %v581_v45  ;;  %751 = vst [vmem:[%s971_s22 + $0x3a0] sm:$0xff] %v582_v46  ;;  %v459_v45 = vpop.permute.xlu0 %458  ;;  %v334_v46 = vld [vmem:[%s952_s19 + $0x4e0] sm:$0xff]  ;;  %v336_v48 = vld [vmem:[%s952_s19 + $0x4f0] sm:$0xff]  ;;  %v627_v49 = vmul.f32 %v464_v44, %v339_v25  ;;  %v630_v52 = vmul.f32 %v464_v44, %v342_v32  ;;  %v631_v55 = vmul.f32 %v464_v44, %v343_v33 }
  0xc9   : > { %752 = vst [vmem:[%s971_s22 + $0x3a8] sm:$0xff] %v583_v50  ;;  %753 = vst.msk [vmem:[%s971_s22 + $0x3b0] sm:$0xff] %vm640_vm0, %v584_v51  ;;  %v628_v50 = vmul.f32 %v464_v44, %v340_v26  ;;  %v629_v51 = vmul.f32 %v464_v44, %v341_v27  ;;  %v337_v53 = vld [vmem:[%s952_s19 + $0x4f8] sm:$0xff]  ;;  %v338_v54 = vld [vmem:[%s952_s19 + $0x500] sm:$0xff]  ;;  %v632_v56 = vmul.f32 %v464_v44, %v344_v34 }
  0xca   : > { %768 = vst [vmem:[%s971_s22 + $0x428] sm:$0xff] %v599_v57  ;;  %769 = vst [vmem:[%s971_s22 + $0x430] sm:$0xff] %v600_v58  ;;  %v633_v57 = vmul.f32 %v464_v44, %v345_v39  ;;  %v620_v58 = vmul.f32 %v459_v45, %v332_v40  ;;  %v623_v61 = vmul.f32 %v459_v45, %v335_v47 }
  0xcb   : > { %770 = vst [vmem:[%s971_s22 + $0x438] sm:$0xff] %v601_v59  ;;  %771 = vst [vmem:[%s971_s22 + $0x440] sm:$0xff] %v602_v60  ;;  %v621_v59 = vmul.f32 %v459_v45, %v333_v41  ;;  %v622_v60 = vmul.f32 %v459_v45, %v334_v46  ;;  %v624_v62 = vmul.f32 %v459_v45, %v336_v48 }
  0xcc   : > { %772 = vst [vmem:[%s971_s22 + $0x448] sm:$0xff] %v603_v0  ;;  %773 = vst [vmem:[%s971_s22 + $0x450] sm:$0xff] %v604_v1  ;;  %v625_v63 = vmul.f32 %v459_v45, %v337_v53  ;;  %v626_v0 = vmul.f32 %v459_v45, %v338_v54 }
  0xcd   : > { %774 = vst.msk [vmem:[%s971_s22 + $0x458] sm:$0xff] %vm640_vm0, %v605_v2  ;;  %761 = vst [vmem:[%s971_s22 + $0x3f0] sm:$0xff] %v592_v3 }
  0xce   : > { %762 = vst [vmem:[%s971_s22 + $0x3f8] sm:$0xff] %v593_v7  ;;  %763 = vst [vmem:[%s971_s22 + $0x400] sm:$0xff] %v594_v8 }
  0xcf   : > { %764 = vst [vmem:[%s971_s22 + $0x408] sm:$0xff] %v595_v9  ;;  %765 = vst [vmem:[%s971_s22 + $0x410] sm:$0xff] %v596_v10 }
  0xd0   : > { %766 = vst [vmem:[%s971_s22 + $0x418] sm:$0xff] %v597_v14  ;;  %767 = vst.msk [vmem:[%s971_s22 + $0x420] sm:$0xff] %vm640_vm0, %v598_v15 }
  0xd1   : > { %782 = vst [vmem:[%s971_s22 + $0x498] sm:$0xff] %v613_v21  ;;  %783 = vst [vmem:[%s971_s22 + $0x4a0] sm:$0xff] %v614_v22 }
  0xd2   : > { %784 = vst [vmem:[%s971_s22 + $0x4a8] sm:$0xff] %v615_v23  ;;  %785 = vst [vmem:[%s971_s22 + $0x4b0] sm:$0xff] %v616_v24 }
  0xd3   : > { %786 = vst [vmem:[%s971_s22 + $0x4b8] sm:$0xff] %v617_v28  ;;  %787 = vst [vmem:[%s971_s22 + $0x4c0] sm:$0xff] %v618_v29 }
  0xd4   : > { %788 = vst.msk [vmem:[%s971_s22 + $0x4c8] sm:$0xff] %vm640_vm0, %v619_v30  ;;  %775 = vst [vmem:[%s971_s22 + $0x460] sm:$0xff] %v606_v31 }
  0xd5   : > { %776 = vst [vmem:[%s971_s22 + $0x468] sm:$0xff] %v607_v35  ;;  %777 = vst [vmem:[%s971_s22 + $0x470] sm:$0xff] %v608_v36 }
  0xd6   : > { %778 = vst [vmem:[%s971_s22 + $0x478] sm:$0xff] %v609_v37  ;;  %779 = vst [vmem:[%s971_s22 + $0x480] sm:$0xff] %v610_v38 }
  0xd7   : > { %780 = vst [vmem:[%s971_s22 + $0x488] sm:$0xff] %v611_v42  ;;  %781 = vst.msk [vmem:[%s971_s22 + $0x490] sm:$0xff] %vm640_vm0, %v612_v43 }
  0xd8   : > { %796 = vst [vmem:[%s971_s22 + $0x508] sm:$0xff] %v627_v49  ;;  %797 = vst [vmem:[%s971_s22 + $0x510] sm:$0xff] %v628_v50 }
  0xd9   : > { %798 = vst [vmem:[%s971_s22 + $0x518] sm:$0xff] %v629_v51  ;;  %799 = vst [vmem:[%s971_s22 + $0x520] sm:$0xff] %v630_v52 }
  0xda   : > { %800 = vst [vmem:[%s971_s22 + $0x528] sm:$0xff] %v631_v55  ;;  %801 = vst [vmem:[%s971_s22 + $0x530] sm:$0xff] %v632_v56 }
  0xdb   : > { %802 = vst.msk [vmem:[%s971_s22 + $0x538] sm:$0xff] %vm640_vm0, %v633_v57  ;;  %789 = vst [vmem:[%s971_s22 + $0x4d0] sm:$0xff] %v620_v58 }
  0xdc   : > { %790 = vst [vmem:[%s971_s22 + $0x4d8] sm:$0xff] %v621_v59  ;;  %791 = vst [vmem:[%s971_s22 + $0x4e0] sm:$0xff] %v622_v60 }
  0xdd   : > { %792 = vst [vmem:[%s971_s22 + $0x4e8] sm:$0xff] %v623_v61  ;;  %793 = vst [vmem:[%s971_s22 + $0x4f0] sm:$0xff] %v624_v62 }
  0xde   : > { %794 = vst [vmem:[%s971_s22 + $0x4f8] sm:$0xff] %v625_v63  ;;  %795 = vst.msk [vmem:[%s971_s22 + $0x500] sm:$0xff] %vm640_vm0, %v626_v0 }
  0xdf PF: > { %s12_s9 = sadd.s32 1, %s890_s9  }
  0xe0   : > { %p9_p4 = scmp.ge.s32.totalorder %s12_s9, 4  }
  0xe2   :  { %11 = sbr.rel (!%p9_p4) target bundleno = 1 (0x1), region = 59 }

</bundles_post_ra>
